<compile_context>
chip_gen: v7x
topology: tpu7x:2x2x1
jax: 0.10.0
libtpu: 0.0.40
codegen_flags: <defaults>
</compile_context>

<pallas_src>
import functools

import jax
import jax.numpy as jnp
from jax.experimental import pallas as pl
from jax.experimental.pallas import tpu as pltpu

LANES = 128
SUBLANES = 8


def _device_defaults():
    """Returns (num_slices, block_rows, vmem_limit_bytes) tuned per TPU generation."""
    kind = ""
    try:
        kind = jax.devices()[0].device_kind.lower()
    except Exception:
        pass
    if "v7" in kind or "7x" in kind:
        # 2 TensorCores/chip but only 64 MiB VMEM per TC: 2 parallel slices,
        # 4 MiB f32 input blocks (16 MiB of double-buffered inputs).
        return 2, 8192, 48 * 1024 * 1024
    if "v6" in kind or "v5" in kind:
        # Single TensorCore, 128 MiB VMEM: 1 slice, 8 MiB f32 input blocks.
        return 1, 16384, 64 * 1024 * 1024
    # Unknown generation: conservative.
    return 1, 8192, 48 * 1024 * 1024


def _cbdice_partial_kernel(pred_ref, target_ref, out_ref, *, block_rows,
                           blocks_per_slice, valid_rows, need_mask,
                           need_sum_p, need_sum_t):
    c = pl.program_id(0)   # parallel slice (one per TensorCore on v7x)
    i = pl.program_id(1)   # sequential block within the slice

    @pl.when(i == 0)
    def _():
        out_ref[...] = jnp.zeros_like(out_ref)

    def accumulate(p, t):
        # (block_rows,128) -> (block_rows/8, 8, 128) reshape splits the major
        # (sublane) axis only, so it lowers to pure vreg adds (no VMEM copy).
        pt = p * t
        out_ref[0, 0, :, :] += pt.reshape(-1, SUBLANES, LANES).sum(axis=0)
        if need_sum_p:
            out_ref[0, 1, :, :] += p.reshape(-1, SUBLANES, LANES).sum(axis=0)
        if need_sum_t:
            out_ref[0, 2, :, :] += t.reshape(-1, SUBLANES, LANES).sum(axis=0)

    if not need_mask:
        # Exactly-divisible grid: no branching, no mask, pure streaming adds.
        accumulate(pred_ref[...].astype(jnp.float32),
                   target_ref[...].astype(jnp.float32))
    else:
        logical_start = (c * blocks_per_slice + i) * block_rows

        # Fast path: whole block is in range -> no mask work at all.
        @pl.when(logical_start + block_rows <= valid_rows)
        def _fast():
            accumulate(pred_ref[...].astype(jnp.float32),
                       target_ref[...].astype(jnp.float32))

        # Tail path: the single partial block straddling valid_rows.  Uses
        # jnp.where (select), so garbage/NaN rows past the valid range are
        # discarded, never multiplied.
        @pl.when(jnp.logical_and(logical_start < valid_rows,
                                 logical_start + block_rows > valid_rows))
        def _tail():
            row_ids = logical_start + jax.lax.broadcasted_iota(
                jnp.int32, (block_rows, LANES), 0)
            valid = row_ids < valid_rows
            p = jnp.where(valid, pred_ref[...].astype(jnp.float32), 0.0)
            t = jnp.where(valid, target_ref[...].astype(jnp.float32), 0.0)
            accumulate(p, t)
        # Clamped duplicate blocks (logical_start >= valid_rows) are skipped.


def cbdice_loss(pred, target, beta=1.0, block_rows=None):
    """Matches cbDiceLoss(beta).forward(pred, target). Returns a scalar f32.

    `beta` must be a static Python float (it is a module hyper-parameter).
    """
    num_slices_hw, default_block_rows, vmem_limit = _device_defaults()
    if block_rows is None:
        block_rows = default_block_rows

    pred_flat = jnp.reshape(pred, (-1,))      # keep native dtype; cast in-kernel
    target_flat = jnp.reshape(target, (-1,))
    n = pred_flat.shape[0]

    # View the flat stream as (rows, 128).  When n is lane-aligned (the common
    # case for NCHW tensors) this reshape is free: no pad, no HBM copy.  Ragged
    # row counts (rows % 8 or rows % block_rows) are handled in-kernel.
    n_pad = max(pl.cdiv(n, LANES) * LANES, SUBLANES * LANES)
    if n_pad != n:
        # TODO(synk): for non-128-aligned sizes jnp.pad materializes a copy of
        # both inputs; a manual-DMA tail path would avoid that extra traffic.
        pred_flat = jnp.pad(pred_flat, (0, n_pad - n))
        target_flat = jnp.pad(target_flat, (0, n_pad - n))

    rows = n_pad // LANES
    pred2d = pred_flat.reshape(rows, LANES)
    target2d = target_flat.reshape(rows, LANES)

    # block_rows must be a multiple of 8 (sublane tiling) and <= rows.
    block_rows = max(SUBLANES, min(block_rows, (rows // SUBLANES) * SUBLANES))
    num_blocks = pl.cdiv(rows, block_rows)
    num_slices = min(num_slices_hw, num_blocks)
    blocks_per_slice = pl.cdiv(num_blocks, num_slices)
    # Mask machinery only traced if some block (tail or clamped duplicate)
    # would run past `rows`.
    need_mask = (num_slices * blocks_per_slice * block_rows) != rows

    need_sum_p = (beta != 0.0)   # static trace-time pruning
    need_sum_t = (beta != 1.0)

    def in_index_map(c, i):
        # Clamp out-of-range logical blocks onto the last real block; the
        # kernel skips their contribution.
        return (jnp.minimum(c * blocks_per_slice + i, num_blocks - 1), 0)

    kernel = functools.partial(
        _cbdice_partial_kernel,
        block_rows=block_rows,
        blocks_per_slice=blocks_per_slice,
        valid_rows=rows,
        need_mask=need_mask,
        need_sum_p=need_sum_p,
        need_sum_t=need_sum_t,
    )

    cost = pl.CostEstimate(
        flops=5 * n,
        transcendentals=0,
        bytes_accessed=int(pred2d.size) * pred2d.dtype.itemsize
        + int(target2d.size) * target2d.dtype.itemsize
        + num_slices * 3 * SUBLANES * LANES * 4,
    )

    partials = pl.pallas_call(
        kernel,
        out_shape=jax.ShapeDtypeStruct((num_slices, 3, SUBLANES, LANES),
                                       jnp.float32),
        grid_spec=pltpu.PrefetchScalarGridSpec(
            num_scalar_prefetch=0,
            grid=(num_slices, blocks_per_slice),
            in_specs=[
                pl.BlockSpec((block_rows, LANES), in_index_map),
                pl.BlockSpec((block_rows, LANES), in_index_map),
            ],
            out_specs=pl.BlockSpec((1, 3, SUBLANES, LANES),
                                   lambda c, i: (c, 0, 0, 0)),
        ),
        compiler_params=pltpu.CompilerParams(
            dimension_semantics=("parallel", "arbitrary"),
            vmem_limit_bytes=vmem_limit,
        ),
        cost_estimate=cost,
    )(pred2d, target2d)

    sums = jnp.sum(partials, axis=(0, 2, 3))        # (3,): tp, sum(p), sum(t)
    tp, sum_p, sum_t = sums[0], sums[1], sums[2]
    # tp + beta*fp + (1-beta)*fn  ==  beta*sum(p) + (1-beta)*sum(t)
    denom = beta * sum_p + (1.0 - beta) * sum_t + 1e-06
    return 1.0 - tp / denom


def cbdice_loss_ref(pred, target, beta=1.0):
    """Pure-JAX reference mirroring the PyTorch module."""
    p = jnp.reshape(pred, (-1,)).astype(jnp.float32)
    t = jnp.reshape(target, (-1,)).astype(jnp.float32)
    tp = jnp.sum(p * t)
    fp = jnp.sum(p * (1.0 - t))
    fn = jnp.sum((1.0 - p) * t)
    denom = tp + beta * fp + (1.0 - beta) * fn + 1e-06
    return 1.0 - tp / denom


if __name__ == "__main__":
    key = jax.random.PRNGKey(0)
    kp, kt, kp2, kt2, kp3, kt3 = jax.random.split(key, 6)

    # Test 1: small NCHW input (aligned, single block, unbranched fast path),
    # beta=1.0 (sum(t) pruned) and beta=0.5.
    pred = jax.nn.sigmoid(jax.random.normal(kp, (2, 4, 16, 16), dtype=jnp.float32))
    target = (jax.random.uniform(kt, (2, 4, 16, 16)) > 0.5).astype(jnp.float32)
    for b in (1.0, 0.5):
        loss = jax.block_until_ready(cbdice_loss(pred, target, beta=b))
        ref = cbdice_loss_ref(pred, target, beta=b)
        assert jnp.allclose(loss, ref, atol=1e-5, rtol=1e-5), (b, loss, ref)

    # Test 2: forced multi-block (small block_rows) with a partial tail block
    # -> exercises the gated masked path; mixed dtypes (bf16 target).
    pred2 = jax.nn.sigmoid(jax.random.normal(kp2, (2, 4, 96, 96), dtype=jnp.float32))
    target2 = (jax.random.uniform(kt2, (2, 4, 96, 96)) > 0.5).astype(jnp.bfloat16)
    loss2 = jax.block_until_ready(cbdice_loss(pred2, target2, beta=0.7, block_rows=256))
    ref2 = cbdice_loss_ref(pred2, target2, beta=0.7)
    assert jnp.allclose(loss2, ref2, atol=1e-5, rtol=1e-5), (loss2, ref2)

    # Test 3: lane-aligned but ragged row count (1536 elems -> 12 rows, not a
    # multiple of 8) -> no wrapper pad, in-kernel tail mask handles the rest.
    pred3 = jax.nn.sigmoid(jax.random.normal(kp3, (2, 3, 16, 16), dtype=jnp.float32))
    target3 = (jax.random.uniform(kt3, (2, 3, 16, 16)) > 0.5).astype(jnp.float32)
    loss3 = jax.block_until_ready(cbdice_loss(pred3, target3, beta=1.0))
    ref3 = cbdice_loss_ref(pred3, target3, beta=1.0)
    assert jnp.allclose(loss3, ref3, atol=1e-5, rtol=1e-5), (loss3, ref3)

    print("KERNEL_OK")
</pallas_src>

<mosaic_0001>
module attributes {stable_mosaic.version = 11 : i64} {
  func.func @_cbdice_partial_kernel(%arg0: i32, %arg1: i32, %arg2: memref<16x128xf32, #tpu.memory_space<vmem>>, %arg3: memref<16x128xf32, #tpu.memory_space<vmem>>, %arg4: memref<1x3x8x128xf32, #tpu.memory_space<vmem>>) attributes {dimension_semantics = [#tpu.dimension_semantics<parallel>, #tpu.dimension_semantics<arbitrary>], iteration_bounds = array<i64: 1, 1>, scalar_prefetch = 0 : i64, scratch_operands = 0 : i64, tpu.core_type = #tpu.core_type<tc>, window_params = [{transform_indices = @transform_0, window_bounds = array<i64: 16, 128>}, {transform_indices = @transform_1, window_bounds = array<i64: 16, 128>}, {transform_indices = @transform_2, window_bounds = array<i64: 1, 3, 8, 128>}]} {
    %c0_i32 = arith.constant 0 : i32
    %0 = arith.cmpi eq, %arg1, %c0_i32 : i32
    %1 = arith.extui %0 : i1 to i32
    %c0_i32_0 = arith.constant 0 : i32
    %2 = arith.cmpi ne, %1, %c0_i32_0 : i32
    scf.if %2 {
      %cst_20 = arith.constant 0.000000e+00 : f32
      %22 = vector.broadcast %cst_20 : f32 to vector<1x3x8x128xf32>
      %c0_21 = arith.constant 0 : index
      %c0_22 = arith.constant 0 : index
      %c0_23 = arith.constant 0 : index
      %c0_24 = arith.constant 0 : index
      %23 = vector.load %arg4[%c0_21, %c0_22, %c0_23, %c0_24] : memref<1x3x8x128xf32, #tpu.memory_space<vmem>>, vector<1x3x8x128xf32>
      tpu.vector_store %arg4[%c0_21, %c0_22, %c0_23, %c0_24], %22 {strides = array<i32>} : memref<1x3x8x128xf32, #tpu.memory_space<vmem>>, vector<1x3x8x128xf32>,
    } else {
    }
    %c0 = arith.constant 0 : index
    %c0_1 = arith.constant 0 : index
    %3 = vector.load %arg2[%c0, %c0_1] : memref<16x128xf32, #tpu.memory_space<vmem>>, vector<16x128xf32>
    %c0_2 = arith.constant 0 : index
    %c0_3 = arith.constant 0 : index
    %4 = vector.load %arg3[%c0_2, %c0_3] : memref<16x128xf32, #tpu.memory_space<vmem>>, vector<16x128xf32>
    %5 = arith.mulf %3, %4 : vector<16x128xf32>
    %c0_4 = arith.constant 0 : index
    %c0_5 = arith.constant 0 : index
    %c0_6 = arith.constant 0 : index
    %c0_7 = arith.constant 0 : index
    %6 = vector.load %arg4[%c0_4, %c0_5, %c0_6, %c0_7] : memref<1x3x8x128xf32, #tpu.memory_space<vmem>>, vector<1x1x8x128xf32>
    %7 = vector.shape_cast %6 : vector<1x1x8x128xf32> to vector<8x128xf32>
    %8 = vector.shape_cast %5 : vector<16x128xf32> to vector<2x8x128xf32>
    %cst = arith.constant dense<0.000000e+00> : vector<8x128xf32>
    %9 = vector.multi_reduction <add>, %8, %cst [0] : vector<2x8x128xf32> to vector<8x128xf32>
    %10 = arith.addf %7, %9 : vector<8x128xf32>
    %c0_8 = arith.constant 0 : index
    %c0_9 = arith.constant 0 : index
    %c0_10 = arith.constant 0 : index
    %c0_11 = arith.constant 0 : index
    %11 = vector.load %arg4[%c0_8, %c0_9, %c0_10, %c0_11] : memref<1x3x8x128xf32, #tpu.memory_space<vmem>>, vector<1x1x8x128xf32>
    %12 = vector.shape_cast %11 : vector<1x1x8x128xf32> to vector<8x128xf32>
    %13 = vector.shape_cast %10 : vector<8x128xf32> to vector<1x1x8x128xf32>
    tpu.vector_store %arg4[%c0_8, %c0_9, %c0_10, %c0_11], %13 {strides = array<i32>} : memref<1x3x8x128xf32, #tpu.memory_space<vmem>>, vector<1x1x8x128xf32>,
    %c0_12 = arith.constant 0 : index
    %c1 = arith.constant 1 : index
    %c0_13 = arith.constant 0 : index
    %c0_14 = arith.constant 0 : index
    %14 = vector.load %arg4[%c0_12, %c1, %c0_13, %c0_14] : memref<1x3x8x128xf32, #tpu.memory_space<vmem>>, vector<1x1x8x128xf32>
    %15 = vector.shape_cast %14 : vector<1x1x8x128xf32> to vector<8x128xf32>
    %16 = vector.shape_cast %3 : vector<16x128xf32> to vector<2x8x128xf32>
    %cst_15 = arith.constant dense<0.000000e+00> : vector<8x128xf32>
    %17 = vector.multi_reduction <add>, %16, %cst_15 [0] : vector<2x8x128xf32> to vector<8x128xf32>
    %18 = arith.addf %15, %17 : vector<8x128xf32>
    %c0_16 = arith.constant 0 : index
    %c1_17 = arith.constant 1 : index
    %c0_18 = arith.constant 0 : index
    %c0_19 = arith.constant 0 : index
    %19 = vector.load %arg4[%c0_16, %c1_17, %c0_18, %c0_19] : memref<1x3x8x128xf32, #tpu.memory_space<vmem>>, vector<1x1x8x128xf32>
    %20 = vector.shape_cast %19 : vector<1x1x8x128xf32> to vector<8x128xf32>
    %21 = vector.shape_cast %18 : vector<8x128xf32> to vector<1x1x8x128xf32>
    tpu.vector_store %arg4[%c0_16, %c1_17, %c0_18, %c0_19], %21 {strides = array<i32>} : memref<1x3x8x128xf32, #tpu.memory_space<vmem>>, vector<1x1x8x128xf32>,
    return
  }
  func.func @transform_0(%arg0: i32, %arg1: i32) -> (i32, i32) {
    %c1_i32 = arith.constant 1 : i32
    %0 = arith.muli %arg0, %c1_i32 : i32
    %1 = arith.addi %0, %arg1 : i32
    %c0_i32 = arith.constant 0 : i32
    %2 = arith.minsi %1, %c0_i32 : i32
    %c0_i32_0 = arith.constant 0 : i32
    %c0_i32_1 = arith.constant 0 : i32
    return %2, %c0_i32_0 : i32, i32
  }
  func.func @transform_1(%arg0: i32, %arg1: i32) -> (i32, i32) {
    %c1_i32 = arith.constant 1 : i32
    %0 = arith.muli %arg0, %c1_i32 : i32
    %1 = arith.addi %0, %arg1 : i32
    %c0_i32 = arith.constant 0 : i32
    %2 = arith.minsi %1, %c0_i32 : i32
    %c0_i32_0 = arith.constant 0 : i32
    %c0_i32_1 = arith.constant 0 : i32
    return %2, %c0_i32_0 : i32, i32
  }
  func.func @transform_2(%arg0: i32, %arg1: i32) -> (i32, i32, i32, i32) {
    %c0_i32 = arith.constant 0 : i32
    %c0_i32_0 = arith.constant 0 : i32
    %c0_i32_1 = arith.constant 0 : i32
    %c0_i32_2 = arith.constant 0 : i32
    return %arg0, %c0_i32, %c0_i32_0, %c0_i32_1 : i32, i32, i32, i32
  }
}

</mosaic_0001>

<bundles_post_ra>
// kernel: tpu_custom_call.1
= control target key start
LH: loop header
LB: loop body
LE: loop exit
PB: predicated region body
PF: predicated region fallthrough
CT: control target
= control target key end

     0   :  { %7 = vsyncpa [#allocation3], 0  ;;  %s248_s0 = inlined_call_operand.hbm [shape: f32[16,128], index: 0, kind: input, shape index: {}]   ;;  %s249_s1 = inlined_call_operand.hbm [shape: f32[16,128], index: 1, kind: input, shape index: {}]   ;;  %s250_s2 = inlined_call_operand.hbm [shape: f32[1,3,8,128], index: 2, kind: output, shape index: {}]  }
   0x1   :  { %8 = vsyncpa [#allocation6], 0 }
   0x2   :  { %9 = vsyncpa [#allocation4], 0  ;;  %s182_s9 = smov [#allocation2]   ;;  %s110_s13 = scalar_lea.hbm %s248_s0, 256 }
   0x3   :  { %s21_s10 = sshll.u32 %s182_s9, 4  ;;  %p111_p0 = scmp.ne.s32.totalorder %s248_s0, %s110_s13  ;;  %s22_s10 = int_to_ptr.vmem [resolvable:$true] %s21_s10 }
   0x4   :  { %p114_p1 = scmp.lt.u32.totalorder %s110_s13, %s248_s0 }
   0x6   :  { %p116_p2 = pnand %p114_p1, %p111_p0 }
   0x8   :  { %119 = shalt.err (!%p116_p2)
}
   0x9   :  { %s120_s18 = scalar_lea.vmem %s22_s10, 256  ;;  %p125_p4 = scmp.lt.s32.totalorder %s22_s10, %s22_s10 }
   0xa   :  { %p121_p3 = scmp.ne.s32.totalorder %s22_s10, %s120_s18  ;;  %p126_p5 = scmp.lt.s32.totalorder %s120_s18, %s120_s18 }
   0xc   :  { %p127_p6 = por %p126_p5, %p125_p4 }
   0xe   :  { %p128_p7 = pnand %p127_p6, %p121_p3 }
  0x10   :  { %131 = shalt.err (!%p128_p7)
}
  0x11   :  { %s183_s19 = smov 128   ;;  %s184_s20 = smov 8  }
  0x12   :  { %27 = dma.hbm_to_vmem [thread:$0]  %s248_s0, 256, %s22_s10, [#allocation3], %s183_s19, %s183_s19, %s184_s20  }
  0x13   :  { %s185_s23 = smov [#allocation5]   ;;  %s132_s27 = scalar_lea.hbm %s249_s1, 256 }
  0x14   :  { %s39_s24 = sshll.u32 %s185_s23, 4  ;;  %p133_p8 = scmp.ne.s32.totalorder %s249_s1, %s132_s27  ;;  %s40_s24 = int_to_ptr.vmem [resolvable:$true] %s39_s24 }
  0x15   :  { %p136_p9 = scmp.lt.u32.totalorder %s132_s27, %s249_s1 }
  0x17   :  { %p138_p10 = pnand %p136_p9, %p133_p8 }
  0x19   :  { %141 = shalt.err (!%p138_p10)
}
  0x1a   :  { %s142_s4 = scalar_lea.vmem %s40_s24, 256  ;;  %p147_p12 = scmp.lt.s32.totalorder %s40_s24, %s40_s24 }
  0x1b   :  { %p143_p11 = scmp.ne.s32.totalorder %s40_s24, %s142_s4  ;;  %p148_p13 = scmp.lt.s32.totalorder %s142_s4, %s142_s4 }
  0x1d   :  { %p149_p0 = por %p148_p13, %p147_p12 }
  0x1f   :  { %p150_p1 = pnand %p149_p0, %p143_p11 }
  0x21   :  { %153 = shalt.err (!%p150_p1)
}
  0x22   :  { %45 = dma.hbm_to_vmem [thread:$0]  %s249_s1, 256, %s40_s24, [#allocation6], %s183_s19, %s183_s19, %s184_s20  }
  0x23   :  { %176 = dma.done.wait [#allocation3], 256  }
  0x24   :  { %177 = vsyncadd [#allocation3], 4294967040 }
  0x25   :  { %178 = dma.done.wait [#allocation6], 256  }
  0x26   :  { %179 = vsyncadd [#allocation6], 4294967040  ;;  %v186_v0 = vmov 0.0   ;;  %v67_v1 = vld [vmem:[#allocation2] sm:$0xff]  ;;  %v68_v2 = vld [vmem:[#allocation2 + $0x8] sm:$0xff]  ;;  %s187_s6 = smov [#allocation7]  }
  0x27   :  { %66 = vst [vmem:[#allocation7 + $0x10] sm:$0xff] %v186_v0  ;;  %v69_v3 = vld [vmem:[#allocation5] sm:$0xff]  ;;  %v70_v4 = vld [vmem:[#allocation5 + $0x8] sm:$0xff]  ;;  %v79_v6 = vadd.f32 %v68_v2, %v67_v1  ;;  %s87_s7 = sshll.u32 %s187_s6, 4  ;;  %s88_s7 = int_to_ptr.vmem [resolvable:$true] %s87_s7 }
  0x28   :  { %v71_v5 = vmul.f32 %v69_v3, %v67_v1  ;;  %v72_v7 = vmul.f32 %v70_v4, %v68_v2  ;;  %s154_s1 = scalar_lea.vmem %s88_s7, 384  ;;  %p159_p3 = scmp.lt.s32.totalorder %s88_s7, %s88_s7 }
  0x29   :  { %81 = vst [vmem:[#allocation7 + $0x8] sm:$0xff] %v79_v6  ;;  %p155_p2 = scmp.ne.s32.totalorder %s88_s7, %s154_s1  ;;  %p160_p4 = scmp.lt.s32.totalorder %s154_s1, %s154_s1 }
  0x2a   :  { %v74_v8 = vadd.f32 %v72_v7, %v71_v5 }
  0x2b   :  { %p161_p5 = por %p160_p4, %p159_p3 }
  0x2c   :  { %76 = vst [vmem:[#allocation7] sm:$0xff] %v74_v8 }
  0x2d   :  { %p162_p6 = pnand %p161_p5, %p155_p2 }
  0x2f   :  { %165 = shalt.err (!%p162_p6)
}
  0x30   :  { %s166_s10 = scalar_lea.hbm %s250_s2, 384 }
  0x31   :  { %p167_p7 = scmp.ne.s32.totalorder %s250_s2, %s166_s10  ;;  %p170_p8 = scmp.lt.u32.totalorder %s166_s10, %s250_s2 }
  0x33   :  { %p172_p9 = pnand %p170_p8, %p167_p7 }
  0x35   :  { %175 = shalt.err (!%p172_p9)
}
  0x36   :  { %93 = dma.vmem_to_hbm [thread:$0]  %s88_s7, 384, %s250_s2, [#allocation4], %s183_s19, %s183_s19, %s184_s20  }
  0x37   :  { %180 = dma.done.wait [#allocation4], 384  }
  0x38   :  { %181 = vsyncadd [#allocation4], 4294966912 }
  0x39   :  { %97 = vsyncpa [#allocation3], 1 }
  0x3a   :  { %98 = vsyncpa [#allocation6], 1 }
  0x3b   :  { %99 = vsyncpa [#allocation4], 1 }

</bundles_post_ra>
